<compile_context>
chip_gen: v5e
topology: v5e:2x2
jax: 0.10.0
libtpu: 0.0.40
codegen_flags: <defaults>
</compile_context>

<pallas_src>
import functools
import math

import jax
import jax.numpy as jnp
from jax.experimental import pallas as pl
from jax.experimental.pallas import tpu as pltpu

_EPS = 1e-12                    # F.normalize default
_MIN_GRID_STEPS = 8             # feed both v7x TensorCores / give pipeline depth
_MIN_BLOCK_ELEMS = 64 * 1024    # don't shrink blocks below ~256 KiB (f32) just for step count
_MAX_SPATIAL_TILE = 32768       # lanes; HBM roofline plateaus well before this
_MAX_ROW_TILE = 8192            # rows for channel_last


# ---------------------------------------------------------------------------
# Generation-aware VMEM sizing
# ---------------------------------------------------------------------------
def _vmem_budget_and_limit():
    """Returns (budget, limit).

    `budget` bounds the whole double-buffered in+out+f32-temp working set used
    when sizing tiles; `limit` is passed as vmem_limit_bytes so the compiler's
    scoped-VMEM default (16/32 MiB) does not clip the larger tiles.
    """
    phys = 128 * 1024 * 1024
    try:
        phys = int(pltpu.get_tpu_info().vmem_capacity_bytes)
    except Exception:
        pass
    if phys <= 64 * 1024 * 1024:
        # v7x-class: only 64 MiB physical per TensorCore -> stay well under.
        return 36 * 1024 * 1024, 48 * 1024 * 1024
    # v5e / v6e: 128 MiB physical.
    return 64 * 1024 * 1024, 100 * 1024 * 1024


def _bytes_per_elem(itemsize):
    # in + out double buffers at the real dtype width, plus ~3 f32 temporaries
    # per element for the in-kernel f32 math.
    return 4 * itemsize + 12


# ---------------------------------------------------------------------------
# Kernels
# ---------------------------------------------------------------------------
def _rms_cf_kernel(x_ref, g_ref, o_ref, *, eps2):
    # x: (Bb, C, TS)   g: (1, C, 1)   (gamma pre-scaled by sqrt(C))
    x = x_ref[...].astype(jnp.float32)
    ss = jnp.sum(x * x, axis=1, keepdims=True)           # (Bb, 1, TS)
    inv = jax.lax.rsqrt(jnp.maximum(ss, eps2))            # == 1 / max(||x||_2, eps)
    g = g_ref[...].astype(jnp.float32)
    o_ref[...] = (x * inv * g).astype(o_ref.dtype)


def _rms_cf_bias_kernel(x_ref, g_ref, b_ref, o_ref, *, eps2):
    x = x_ref[...].astype(jnp.float32)
    ss = jnp.sum(x * x, axis=1, keepdims=True)
    inv = jax.lax.rsqrt(jnp.maximum(ss, eps2))
    g = g_ref[...].astype(jnp.float32)
    b = b_ref[...].astype(jnp.float32)
    o_ref[...] = (x * inv * g + b).astype(o_ref.dtype)


def _rms_cl_kernel(x_ref, g_ref, o_ref, *, eps2):
    # x: (TN, C)   g: (1, C)   lane-axis reduction (XLU slot, free under DMA)
    x = x_ref[...].astype(jnp.float32)
    ss = jnp.sum(x * x, axis=-1, keepdims=True)           # (TN, 1)
    inv = jax.lax.rsqrt(jnp.maximum(ss, eps2))
    g = g_ref[...].astype(jnp.float32)
    o_ref[...] = (x * inv * g).astype(o_ref.dtype)


def _rms_cl_bias_kernel(x_ref, g_ref, b_ref, o_ref, *, eps2):
    x = x_ref[...].astype(jnp.float32)
    ss = jnp.sum(x * x, axis=-1, keepdims=True)
    inv = jax.lax.rsqrt(jnp.maximum(ss, eps2))
    g = g_ref[...].astype(jnp.float32)
    b = b_ref[...].astype(jnp.float32)
    o_ref[...] = (x * inv * g + b).astype(o_ref.dtype)


# ---------------------------------------------------------------------------
# Tile-size selection (mem-bound kernel: big lane-dense tiles, VMEM-bounded)
# ---------------------------------------------------------------------------
def _choose_cf_tiles(B, C, S, itemsize, budget):
    """Pick (Bb, TS) for channel_first blocks of shape (Bb, C, TS)."""
    per_lane = C * _bytes_per_elem(itemsize)        # one lane of S, one batch row
    lane_cap = max(128, min(_MAX_SPATIAL_TILE, (budget // per_lane // 128) * 128))

    if S <= lane_cap:
        ts = S                                      # full spatial extent per block
        # Fuse multiple batches per block so small-spatial layers still get
        # large DMAs and few grid steps.
        bb = max(1, min(B, budget // max(1, per_lane * max(ts, 1))))
    else:
        ts = lane_cap
        bb = 1

    def steps(bb_, ts_):
        return pl.cdiv(B, bb_) * pl.cdiv(S, ts_)

    # Keep enough grid steps to shard across v7x's two cores and give the
    # pipeliner depth, but never shrink a block below the point where per-step
    # overhead would dominate (tiny problems stay as one big block).
    while steps(bb, ts) < _MIN_GRID_STEPS and bb * C * ts > _MIN_BLOCK_ELEMS:
        if bb > 1:
            bb = max(1, bb // 2)
        else:
            new_ts = (ts // 2 // 128) * 128
            if new_ts >= 128:
                ts = new_ts
            else:
                break
    return bb, ts


def _choose_cl_tile(N, C, itemsize, budget):
    """Pick TN for channel_last blocks of shape (TN, C)."""
    c_pad = max(128, ((C + 127) // 128) * 128)      # lane padding in VMEM
    per_row = c_pad * _bytes_per_elem(itemsize)
    tn = max(8, min(_MAX_ROW_TILE, (budget // per_row // 8) * 8))
    tn = min(tn, N)                                 # full extent is always legal

    while pl.cdiv(N, tn) < _MIN_GRID_STEPS and tn > 8 and tn * c_pad > _MIN_BLOCK_ELEMS:
        new_tn = max(8, (tn // 2 // 8) * 8)
        if new_tn >= tn:
            break
        tn = new_tn
    return tn


# ---------------------------------------------------------------------------
# Wrapper
# ---------------------------------------------------------------------------
def rms_norm(x, gamma, bias=None, channel_first=True, eps=_EPS):
    """Pallas implementation of the RMSNorm module forward pass."""
    dim = gamma.shape[0]
    scale = float(dim) ** 0.5
    eps2 = float(eps) * float(eps)
    g_scaled = gamma.astype(jnp.float32) * scale    # fold sqrt(dim) into gamma once
    itemsize = jnp.dtype(x.dtype).itemsize
    budget, vmem_limit = _vmem_budget_and_limit()

    if channel_first:
        B, C = x.shape[0], x.shape[1]
        S = math.prod(x.shape[2:]) if x.ndim > 2 else 1
        x3 = x.reshape(B, C, S)
        bb, ts = _choose_cf_tiles(B, C, S, itemsize, budget)
        grid = (pl.cdiv(B, bb), pl.cdiv(S, ts))

        in_specs = [
            pl.BlockSpec((bb, C, ts), lambda b, s: (b, 0, s)),
            pl.BlockSpec((1, C, 1), lambda b, s: (0, 0, 0)),
        ]
        args = [x3, g_scaled.reshape(1, C, 1)]
        kernel = functools.partial(_rms_cf_kernel, eps2=eps2)
        if bias is not None:
            in_specs.append(pl.BlockSpec((1, C, 1), lambda b, s: (0, 0, 0)))
            args.append(bias.astype(jnp.float32).reshape(1, C, 1))
            kernel = functools.partial(_rms_cf_bias_kernel, eps2=eps2)

        total = B * C * S
        cost = pl.CostEstimate(flops=3 * total, transcendentals=B * S,
                               bytes_accessed=2 * total * itemsize)

        out = pl.pallas_call(
            kernel,
            out_shape=jax.ShapeDtypeStruct((B, C, S), x.dtype),
            grid_spec=pltpu.PrefetchScalarGridSpec(
                num_scalar_prefetch=0,
                grid=grid,
                in_specs=in_specs,
                out_specs=pl.BlockSpec((bb, C, ts), lambda b, s: (b, 0, s)),
            ),
            compiler_params=pltpu.CompilerParams(
                dimension_semantics=("parallel", "parallel"),
                vmem_limit_bytes=vmem_limit),
            cost_estimate=cost,
        )(*args)
        return out.reshape(x.shape)

    # channel_last: normalize over the last axis, lane-dense row tiles, no transposes.
    # TODO(synk): when C < 128 (masked vst lane width), pack k=128//C logical rows
    # per 128-lane row with a segmented sum, or keep such tensors channel_first.
    C = x.shape[-1]
    N = math.prod(x.shape[:-1]) if x.ndim > 1 else 1
    x2 = x.reshape(N, C)
    tn = _choose_cl_tile(N, C, itemsize, budget)
    grid = (pl.cdiv(N, tn),)

    in_specs = [
        pl.BlockSpec((tn, C), lambda i: (i, 0)),
        pl.BlockSpec((1, C), lambda i: (0, 0)),
    ]
    args = [x2, g_scaled.reshape(1, C)]
    kernel = functools.partial(_rms_cl_kernel, eps2=eps2)
    if bias is not None:
        in_specs.append(pl.BlockSpec((1, C), lambda i: (0, 0)))
        args.append(bias.astype(jnp.float32).reshape(1, C))
        kernel = functools.partial(_rms_cl_bias_kernel, eps2=eps2)

    total = N * C
    cost = pl.CostEstimate(flops=3 * total, transcendentals=N,
                           bytes_accessed=2 * total * itemsize)

    out = pl.pallas_call(
        kernel,
        out_shape=jax.ShapeDtypeStruct((N, C), x.dtype),
        grid_spec=pltpu.PrefetchScalarGridSpec(
            num_scalar_prefetch=0,
            grid=grid,
            in_specs=in_specs,
            out_specs=pl.BlockSpec((tn, C), lambda i: (i, 0)),
        ),
        compiler_params=pltpu.CompilerParams(
            dimension_semantics=("parallel",),
            vmem_limit_bytes=vmem_limit),
        cost_estimate=cost,
    )(*args)
    return out.reshape(x.shape)


# ---------------------------------------------------------------------------
# Pure-JAX reference of the PyTorch forward
# ---------------------------------------------------------------------------
def _reference(x, gamma, bias, channel_first=True, eps=_EPS):
    C = gamma.shape[0]
    scale = float(C) ** 0.5
    axis = 1 if channel_first else -1
    shp = [1] * x.ndim
    shp[axis] = C
    xf = x.astype(jnp.float32)
    norm = jnp.sqrt(jnp.sum(xf * xf, axis=axis, keepdims=True))
    y = xf / jnp.maximum(norm, eps) * scale * gamma.reshape(shp).astype(jnp.float32)
    if bias is not None:
        y = y + bias.reshape(shp).astype(jnp.float32)
    return y.astype(x.dtype)


if __name__ == "__main__":
    key = jax.random.PRNGKey(0)
    kx, kg, kb, kx2, kg2, kx3 = jax.random.split(key, 6)

    # channel_first (NCHW video-VAE style): B=2, C=4, H=16, W=16, with bias
    B, C, H, W = 2, 4, 16, 16
    x = jax.random.normal(kx, (B, C, H, W), dtype=jnp.float32)
    gamma = jnp.ones((C,), jnp.float32) + 0.1 * jax.random.normal(kg, (C,))
    bias = 0.05 * jax.random.normal(kb, (C,), dtype=jnp.float32)

    out = jax.block_until_ready(rms_norm(x, gamma, bias=bias, channel_first=True))
    ref = _reference(x, gamma, bias, channel_first=True)
    assert out.shape == x.shape and out.dtype == x.dtype
    assert jnp.allclose(out, ref, atol=1e-5, rtol=1e-5)

    # channel_last path (normalize over last axis), no bias: (2, 8, 32)
    D = 32
    x2 = jax.random.normal(kx2, (2, 8, D), dtype=jnp.float32)
    gamma2 = jnp.ones((D,), jnp.float32) + 0.1 * jax.random.normal(kg2, (D,))
    out2 = jax.block_until_ready(rms_norm(x2, gamma2, bias=None, channel_first=False))
    ref2 = _reference(x2, gamma2, None, channel_first=False)
    assert out2.shape == x2.shape and out2.dtype == x2.dtype
    assert jnp.allclose(out2, ref2, atol=1e-5, rtol=1e-5)

    # bf16 channel_first path (exercises real-itemsize tile accounting)
    x3 = jax.random.normal(kx3, (2, 8, 8, 16), dtype=jnp.bfloat16)
    gamma3 = jnp.ones((8,), jnp.float32)
    out3 = jax.block_until_ready(rms_norm(x3, gamma3, bias=None, channel_first=True))
    ref3 = _reference(x3, gamma3, None, channel_first=True)
    assert out3.shape == x3.shape and out3.dtype == x3.dtype
    assert jnp.allclose(out3.astype(jnp.float32), ref3.astype(jnp.float32),
                        atol=5e-2, rtol=2e-2)

    print("KERNEL_OK")
</pallas_src>

<mosaic_0001>
module attributes {stable_mosaic.version = 11 : i64} {
  func.func @_rms_cf_bias_kernel(%arg0: i32, %arg1: i32, %arg2: memref<2x4x256xf32, #tpu.memory_space<vmem>>, %arg3: memref<1x4x1xf32, #tpu.memory_space<vmem>>, %arg4: memref<1x4x1xf32, #tpu.memory_space<vmem>>, %arg5: memref<2x4x256xf32, #tpu.memory_space<vmem>>) attributes {dimension_semantics = [#tpu.dimension_semantics<parallel>, #tpu.dimension_semantics<parallel>], iteration_bounds = array<i64: 1, 1>, scalar_prefetch = 0 : i64, scratch_operands = 0 : i64, tpu.core_type = #tpu.core_type<tc>, window_params = [{transform_indices = @transform_0, window_bounds = array<i64: 2, 4, 256>}, {pipeline_mode = #tpu.pipeline_mode<synchronous>, transform_indices = @transform_1, window_bounds = array<i64: 1, 4, 1>}, {pipeline_mode = #tpu.pipeline_mode<synchronous>, transform_indices = @transform_2, window_bounds = array<i64: 1, 4, 1>}, {transform_indices = @transform_3, window_bounds = array<i64: 2, 4, 256>}]} {
    %c0 = arith.constant 0 : index
    %c0_0 = arith.constant 0 : index
    %c0_1 = arith.constant 0 : index
    %0 = vector.load %arg2[%c0, %c0_0, %c0_1] : memref<2x4x256xf32, #tpu.memory_space<vmem>>, vector<2x4x256xf32>
    %1 = arith.mulf %0, %0 : vector<2x4x256xf32>
    %cst = arith.constant dense<0.000000e+00> : vector<2x256xf32>
    %2 = vector.multi_reduction <add>, %1, %cst [1] : vector<2x4x256xf32> to vector<2x256xf32>
    %3 = vector.shape_cast %2 : vector<2x256xf32> to vector<2x1x256xf32>
    %cst_2 = arith.constant 1.000000e-24 : f32
    %4 = vector.broadcast %cst_2 : f32 to vector<2x1x256xf32>
    %5 = arith.maximumf %3, %4 : vector<2x1x256xf32>
    %6 = math.rsqrt %5 : vector<2x1x256xf32>
    %c0_3 = arith.constant 0 : index
    %c0_4 = arith.constant 0 : index
    %c0_5 = arith.constant 0 : index
    %7 = vector.load %arg3[%c0_3, %c0_4, %c0_5] : memref<1x4x1xf32, #tpu.memory_space<vmem>>, vector<1x4x1xf32>
    %c0_6 = arith.constant 0 : index
    %c0_7 = arith.constant 0 : index
    %c0_8 = arith.constant 0 : index
    %8 = vector.load %arg4[%c0_6, %c0_7, %c0_8] : memref<1x4x1xf32, #tpu.memory_space<vmem>>, vector<1x4x1xf32>
    %9 = vector.broadcast %6 : vector<2x1x256xf32> to vector<2x4x256xf32>
    %10 = arith.mulf %0, %9 : vector<2x4x256xf32>
    %11 = vector.broadcast %7 : vector<1x4x1xf32> to vector<2x4x256xf32>
    %12 = arith.mulf %10, %11 : vector<2x4x256xf32>
    %13 = vector.broadcast %8 : vector<1x4x1xf32> to vector<2x4x256xf32>
    %14 = arith.addf %12, %13 : vector<2x4x256xf32>
    %c0_9 = arith.constant 0 : index
    %c0_10 = arith.constant 0 : index
    %c0_11 = arith.constant 0 : index
    %15 = vector.load %arg5[%c0_9, %c0_10, %c0_11] : memref<2x4x256xf32, #tpu.memory_space<vmem>>, vector<2x4x256xf32>
    tpu.vector_store %arg5[%c0_9, %c0_10, %c0_11], %14 {strides = array<i32>} : memref<2x4x256xf32, #tpu.memory_space<vmem>>, vector<2x4x256xf32>,
    return
  }
  func.func @transform_0(%arg0: i32, %arg1: i32) -> (i32, i32, i32) {
    %c0_i32 = arith.constant 0 : i32
    %c0_i32_0 = arith.constant 0 : i32
    return %arg0, %c0_i32, %arg1 : i32, i32, i32
  }
  func.func @transform_1(%arg0: i32, %arg1: i32) -> (i32, i32, i32) {
    %c0_i32 = arith.constant 0 : i32
    %c0_i32_0 = arith.constant 0 : i32
    %c0_i32_1 = arith.constant 0 : i32
    %c0_i32_2 = arith.constant 0 : i32
    return %c0_i32, %c0_i32_0, %c0_i32_1 : i32, i32, i32
  }
  func.func @transform_2(%arg0: i32, %arg1: i32) -> (i32, i32, i32) {
    %c0_i32 = arith.constant 0 : i32
    %c0_i32_0 = arith.constant 0 : i32
    %c0_i32_1 = arith.constant 0 : i32
    %c0_i32_2 = arith.constant 0 : i32
    return %c0_i32, %c0_i32_0, %c0_i32_1 : i32, i32, i32
  }
  func.func @transform_3(%arg0: i32, %arg1: i32) -> (i32, i32, i32) {
    %c0_i32 = arith.constant 0 : i32
    %c0_i32_0 = arith.constant 0 : i32
    return %arg0, %c0_i32, %arg1 : i32, i32, i32
  }
}

</mosaic_0001>

<bundles_post_ra>
// kernel: tpu_custom_call.1
= control target key start
LH: loop header
LB: loop body
LE: loop exit
PB: predicated region body
PF: predicated region fallthrough
CT: control target
= control target key end

     0   :  { %8 = vsyncpa [#allocation3], 0  ;;  %s311_s0 = inlined_call_operand.hbm [shape: f32[2,4,256], index: 0, kind: input, shape index: {}]   ;;  %s312_s1 = inlined_call_operand.vmem [shape: f32[1,4,1], index: 1, kind: input, shape index: {}]   ;;  %s313_s2 = inlined_call_operand.vmem [shape: f32[1,4,1], index: 2, kind: input, shape index: {}]   ;;  %s314_s3 = inlined_call_operand.hbm [shape: f32[2,4,256], index: 3, kind: output, shape index: {}]  }
   0x1   :  { %9 = vsyncpa [#allocation4], 0  ;;  %s14_s14 = sshll.u32 %s311_s0, 4  ;;  %s245_s15 = smov [#allocation2]   ;;  %s15_s14 = int_to_ptr.hbm [resolvable:$true] %s14_s14 }
   0x2   :  { %s16_s16 = sshll.u32 %s245_s15, 4  ;;  %s246_s17 = smov 128   ;;  %s17_s16 = int_to_ptr.vmem [resolvable:$true] %s16_s16 }
   0x3   :  { %s247_s18 = smov 8  }
   0x4   :  { %22 = dma.hbm_to_vmem [thread:$0]  %s15_s14, 256, %s17_s16, [#allocation3], %s246_s17, %s246_s17, %s247_s18  }
   0x5   :  { %241 = dma.done.wait [#allocation3], 256  }
   0x6   :  { %242 = vsyncadd [#allocation3], 4294967040  ;;  %v248_v0 = vmov 0   ;;  %v121_v1 = vld [vmem:[%s312_s1] sm:$0xf]  ;;  %v283_v3 = vld [vmem:[#allocation2] sm:$0xff] }
   0x7   :  { %184 = vset.pattern.permute.xlu0 %v248_v0  ;;  %v122_v2 = vld [vmem:[%s313_s2] sm:$0xf]  ;;  %v285_v4 = vld [vmem:[#allocation2 + $0x8] sm:$0xff]  ;;  %v33_v5 = vmul.f32 %v283_v3, %v283_v3  ;;  %vm48_vm0 = vcmask 1043456   ;;  %s250_s1 = smov [#allocation5]   ;;  %s165_s24 = sshll.u32 %s314_s3, 4  ;;  %s166_s24 = int_to_ptr.hbm [resolvable:$true] %s165_s24 }
   0x8   :  { %137 = vperm.xlu0 %184, %v121_v1   ;;  %v34_v6 = vmul.f32 %v285_v4, %v285_v4  ;;  %s163_s2 = sshll.u32 %s250_s1, 4  ;;  %s164_s2 = int_to_ptr.vmem [resolvable:$true] %s163_s2 }
   0x9   :  { %37 = vst [vmem:[#allocation1] ss:$2 sm:$0xff] %v33_v5 }
   0xa   :  { %41 = vst [vmem:[#allocation1 + $0x10] ss:$2 sm:$0xff] %v34_v6 }
  0x10   :  { %148 = vperm.xlu0 %184, %v122_v2   ;;  %v39_v7 = vld.sshfl [vmem:[#allocation1 + $0x8] sm:$0xff pattern:$0x75316420]  ;;  %v38_v10 = vld.sshfl [vmem:[#allocation1] sm:$0xff pattern:$0x75316420] }
  0x11   :  { %v43_v8 = vld.sshfl [vmem:[#allocation1 + $0x18] sm:$0xff pattern:$0x75316420]  ;;  %v56_v9 = vsel %vm48_vm0, %v39_v7, 0.0  ;;  %v49_v14 = vsel %vm48_vm0, %v38_v10, 0.0 }
  0x12   :  { %v70_v11 = vsel %vm48_vm0, %v43_v8, 0.0  ;;  %v42_v12 = vld.sshfl [vmem:[#allocation1 + $0x10] sm:$0xff pattern:$0x75316420]  ;;  %v57_v13 = vrot.slane %v56_v9, 4  ;;  %v50_v17 = vrot.slane %v49_v14, 4 }
  0x13   :  { %v71_v15 = vrot.slane %v70_v11, 4  ;;  %v63_v16 = vsel %vm48_vm0, %v42_v12, 0.0  ;;  %v249_v8 = vmov 839922192  }
  0x14   :  { %v58_v18 = vadd.f32 %v57_v13, %v56_v9  ;;  %v64_v19 = vrot.slane %v63_v16, 4  ;;  %v51_v21 = vadd.f32 %v50_v17, %v49_v14  ;;  %v140_v9 = vunpack.c.l.s4 %v249_v8 }
  0x15   :  { %v72_v20 = vadd.f32 %v71_v15, %v70_v11 }
  0x16   :  { %v59_v22 = vrot.slane %v58_v18, 2  ;;  %v65_v23 = vadd.f32 %v64_v19, %v63_v16  ;;  %v52_v25 = vrot.slane %v51_v21, 2  ;;  %v141_v15 = vunpack.c.0.s8 %v140_v9 }
  0x17   :  { %v73_v24 = vrot.slane %v72_v20, 2 }
  0x18   :  { %v60_v26 = vadd.f32 %v59_v22, %v58_v18  ;;  %v66_v27 = vrot.slane %v65_v23, 2  ;;  %v53_v29 = vadd.f32 %v52_v25, %v51_v21 }
  0x19   :  { %v74_v28 = vadd.f32 %v73_v24, %v72_v20 }
  0x1a   :  { %v61_v30 = vrot.slane %v60_v26, 1  ;;  %v67_v31 = vadd.f32 %v66_v27, %v65_v23  ;;  %v54_v33 = vrot.slane %v53_v29, 1 }
  0x1b   :  { %v75_v32 = vrot.slane %v74_v28, 1 }
  0x1c   :  { %v62_v34 = vadd.f32 %v61_v30, %v60_v26  ;;  %v68_v35 = vrot.slane %v67_v31, 1  ;;  %v55_v37 = vadd.f32 %v54_v33, %v53_v29 }
  0x1d   :  { %v76_v36 = vadd.f32 %v75_v32, %v74_v28 }
  0x1e   :  { %v78_v38 = vmax.f32 %v62_v34, 1e-24  ;;  %v69_v39 = vadd.f32 %v68_v35, %v67_v31  ;;  %v77_v41 = vmax.f32 %v55_v37, 1e-24 }
  0x1f   :  { %v80_v40 = vmax.f32 %v76_v36, 1e-24 }
  0x20   :  { %185 = vrsqrt.f32 %v78_v38  ;;  %v79_v42 = vmax.f32 %v69_v39, 1e-24  ;;  %vm97_vm1 = vweird.f32 %v78_v38  ;;  %vm87_vm6 = vweird.f32 %v77_v41 }
  0x21   :  { %187 = vrsqrt.f32 %v80_v40  ;;  %vm117_vm3 = vweird.f32 %v80_v40 }
  0x22   :  { %189 = vrsqrt.f32 %v77_v41  ;;  %vm107_vm9 = vweird.f32 %v79_v42 }
  0x23   :  { %191 = vrsqrt.f32 %v79_v42 }
  0x26   :  { %v186_v43 = vpop.eup %185 }
  0x27   :  { %v188_v44 = vpop.eup %187  ;;  %v92_v46 = vmul.f32 %v186_v43, %v78_v38  ;;  %vm98_vm2 = vweird.f32 %v186_v43 }
  0x28   :  { %v190_v45 = vpop.eup %189  ;;  %v112_v47 = vmul.f32 %v188_v44, %v80_v40  ;;  %vm118_vm4 = vweird.f32 %v188_v44  ;;  %vm295_vm5 = vmor %vm97_vm1, %vm98_vm2 }
  0x29   :  { %v192_v48 = vpop.eup %191  ;;  %v82_v49 = vmul.f32 %v190_v45, %v77_v41  ;;  %v93_v50 = vmul.f32 %v186_v43, %v92_v46  ;;  %vm88_vm7 = vweird.f32 %v190_v45  ;;  %vm119_vm8 = vmor %vm117_vm3, %vm118_vm4 }
  0x2a   :  { %v102_v51 = vmul.f32 %v192_v48, %v79_v42  ;;  %v113_v52 = vmul.f32 %v188_v44, %v112_v47  ;;  %vm108_vm10 = vweird.f32 %v192_v48  ;;  %vm89_vm11 = vmor %vm87_vm6, %vm88_vm7 }
  0x2b   :  { %v83_v53 = vmul.f32 %v190_v45, %v82_v49  ;;  %v94_v54 = vmul.f32 0.5, %v93_v50  ;;  %vm109_vm12 = vmor %vm107_vm9, %vm108_vm10 }
  0x2c   :  { %v103_v55 = vmul.f32 %v192_v48, %v102_v51  ;;  %v114_v56 = vmul.f32 0.5, %v113_v52 }
  0x2d   :  { %v84_v57 = vmul.f32 0.5, %v83_v53  ;;  %v95_v58 = vsub.f32 1.5, %v94_v54 }
  0x2e   :  { %v104_v59 = vmul.f32 0.5, %v103_v55  ;;  %v115_v60 = vsub.f32 1.5, %v114_v56 }
  0x2f   :  { %v85_v61 = vsub.f32 1.5, %v84_v57  ;;  %v96_v62 = vmul.f32 %v186_v43, %v95_v58 }
  0x30   :  { %v105_v0 = vsub.f32 1.5, %v104_v59  ;;  %v116_v1 = vmul.f32 %v188_v44, %v115_v60 }
  0x31   :  { %v86_v2 = vmul.f32 %v190_v45, %v85_v61  ;;  %v100_v5 = vsel %vm295_vm5, %v186_v43, %v96_v62 }
  0x32   :  { %v106_v6 = vmul.f32 %v192_v48, %v105_v0  ;;  %v120_v7 = vsel %vm119_vm8, %v188_v44, %v116_v1  ;;  %v127_v10 = vrot.slane %v100_v5, 4 }
  0x33   :  { %v128_v11 = vrot.slane %v120_v7, 4  ;;  %v90_v12 = vsel %vm89_vm11, %v190_v45, %v86_v2 }
  0x34   :  { %v110_v13 = vsel %vm109_vm12, %v192_v48, %v106_v6  ;;  %v129_v16 = vsel %vm48_vm0, %v90_v12, %v127_v10 }
  0x35   :  { %v130_v17 = vsel %vm48_vm0, %v110_v13, %v128_v11  ;;  %v133_v18 = vmul.f32 %v129_v16, %v283_v3 }
  0x36   :  { %v134_v19 = vmul.f32 %v130_v17, %v285_v4 }
  0x7a   :  { %v138_v14 = vpop.permute.xlu0 %137 }
  0x7b   :  { %v142_v20 = vperm.slane %v138_v14, %v141_v15 }
  0x7d   :  { %v144_v22 = vmul.f32 %v142_v20, %v133_v18  ;;  %v145_v23 = vmul.f32 %v142_v20, %v134_v19 }
  0x82   :  { %v149_v21 = vpop.permute.xlu0 %148 }
  0x83   :  { %v153_v24 = vperm.slane %v149_v21, %v141_v15 }
  0x85   :  { %v155_v25 = vadd.f32 %v153_v24, %v144_v22  ;;  %v156_v26 = vadd.f32 %v153_v24, %v145_v23 }
  0x87   :  { %157 = vst [vmem:[#allocation5] sm:$0xff] %v155_v25 }
  0x88   :  { %158 = vst [vmem:[#allocation5 + $0x8] sm:$0xff] %v156_v26 }
  0x89   :  { %171 = dma.vmem_to_hbm [thread:$0]  %s164_s2, 256, %s166_s24, [#allocation4], %s246_s17, %s246_s17, %s247_s18  }
  0x8a   :  { %243 = dma.done.wait [#allocation4], 256  }
  0x8b   :  { %244 = vsyncadd [#allocation4], 4294967040 }
  0x8c   :  { %176 = vsyncpa [#allocation3], 1 }
  0x8d   :  { %177 = vsyncpa [#allocation4], 1 }

</bundles_post_ra>
